<compile_context>
chip_gen: v5e
topology: v5e:2x2
jax: 0.10.0
libtpu: 0.0.40
codegen_flags: <defaults>
</compile_context>

<pallas_src>
import jax
import jax.numpy as jnp
from jax import lax
from jax.experimental import pallas as pl
from jax.experimental.pallas import tpu as pltpu

K = 3  # kernel_size (padding = K >> 1 = 1, stride = 1)


def make_one_conv_kernel(use_relu: bool, H: int, W: int):
    Hp, Wp = H + 2, W + 2
    M = Hp * Wp                 # padded flat spatial size (lane axis)
    base = 2 * Wp               # flat halo on each end of the flat axis
    offs = [(dh - 1) * Wp + (dw - 1) for dh in range(K) for dw in range(K)]

    def one_conv_kernel(xext_ref, mask_ref, w1_ref, b1_ref, a_ref,
                        w2_ref, b2_ref, s1_ref, s2_ref, out_ref, hbuf_ref):
        # xext_ref: (1, Cin, base + M + base) spatially padded, flat-padded input
        # mask_ref: (1, M)                    1.0 on real pixels, 0.0 on the halo
        # w1_ref  : (Cgr, 9*Cin)              conv  weights, im2col layout
        # b1_ref  : (Cgr, 1)                  conv  bias
        # a_ref   : (Cgr, 1)                  PReLU per-channel slope
        # w2_ref  : (Cin, 9*Cgr)              conv1 weights, im2col layout
        # b2_ref  : (Cin, 1)                  conv1 bias
        # s1/s2   : (1, 1) SMEM scalars       Scale params (weight1/weight2)
        # out_ref : (1, Cin, M)               result on the padded flat grid
        # hbuf_ref: (Cgr, base + M + base)    VMEM scratch for the intermediate
        Cgr = w1_ref.shape[0]

        # ---- conv: Cin -> Cgr, single im2col matmul (K = 9*Cin) ----
        patches1 = jnp.concatenate(
            [xext_ref[0, :, base + o: base + o + M] for o in offs], axis=0)
        z1 = jnp.dot(w1_ref[...], patches1,
                     preferred_element_type=jnp.float32) + b1_ref[...]

        # ---- PReLU (per-channel slope) ----
        if use_relu:
            z1 = jnp.where(z1 > 0, z1, z1 * a_ref[...])

        # zero the 1-pixel spatial border (those flat positions wrapped across
        # rows / read the flat halo) so it acts as conv1's zero padding
        z1 = z1 * mask_ref[...]

        # stash into the flat-padded scratch; only the small flat halos need
        # zeroing (the M-wide interior is fully overwritten every grid step)
        hbuf_ref[:, :base] = jnp.zeros((Cgr, base), dtype=hbuf_ref.dtype)
        hbuf_ref[:, base + M:] = jnp.zeros((Cgr, base), dtype=hbuf_ref.dtype)
        hbuf_ref[:, base:base + M] = z1

        # ---- conv1: Cgr -> Cin, single im2col matmul (K = 9*Cgr) ----
        patches2 = jnp.concatenate(
            [hbuf_ref[:, base + o: base + o + M] for o in offs], axis=0)
        z2 = jnp.dot(w2_ref[...], patches2,
                     preferred_element_type=jnp.float32) + b2_ref[...]

        # ---- residual with learned scales: s1 * x + s2 * conv1(...) ----
        xc = xext_ref[0, :, base:base + M]
        out_ref[0] = s1_ref[0, 0] * xc + s2_ref[0, 0] * z2

    return one_conv_kernel


def one_conv_forward(x_nchw, params, relu=True):
    """x_nchw: (N, Cin, H, W) float32. Returns (N, Cin, H, W)."""
    w1, b1, a, w2, b2, s1, s2 = params
    N, Cin, H, W = x_nchw.shape
    Cgr = w1.shape[-1]
    Hp, Wp = H + 2, W + 2
    M = Hp * Wp
    base = 2 * Wp
    Lext = M + 2 * base

    # spatial zero-pad (pad=1), flatten spatial, then pad the flat axis by 2*Wp
    # on each side so every 3x3 tap is a static lane-axis slice in the kernel.
    xpad = jnp.pad(x_nchw, ((0, 0), (0, 0), (1, 1), (1, 1)))        # (N,Cin,Hp,Wp)
    xext = jnp.pad(xpad.reshape(N, Cin, M), ((0, 0), (0, 0), (base, base)))

    # interior mask over the padded flat grid (1 = real pixel, 0 = halo)
    p = jnp.arange(M)
    row, col = p // Wp, p % Wp
    interior = (row >= 1) & (row <= H) & (col >= 1) & (col <= W)
    mask = interior.astype(jnp.float32).reshape(1, M)

    # im2col weight layout (Cout, 9*Cin_tap), tap order matching the kernel
    w1cat = jnp.transpose(w1.reshape(K * K, Cin, Cgr), (2, 0, 1)).reshape(Cgr, K * K * Cin)
    w2cat = jnp.transpose(w2.reshape(K * K, Cgr, Cin), (2, 0, 1)).reshape(Cin, K * K * Cgr)
    b1c = b1.reshape(Cgr, 1)
    b2c = b2.reshape(Cin, 1)
    ac = a.reshape(Cgr, 1)
    s1r = s1.reshape(1, 1)
    s2r = s2.reshape(1, 1)

    out_flat = pl.pallas_call(
        make_one_conv_kernel(relu, H, W),
        out_shape=jax.ShapeDtypeStruct((N, Cin, M), jnp.float32),
        grid_spec=pltpu.PrefetchScalarGridSpec(
            num_scalar_prefetch=0,
            grid=(N,),
            in_specs=[
                pl.BlockSpec((1, Cin, Lext), lambda n: (n, 0, 0)),
                pl.BlockSpec((1, M), lambda n: (0, 0)),
                pl.BlockSpec((Cgr, K * K * Cin), lambda n: (0, 0)),
                pl.BlockSpec((Cgr, 1), lambda n: (0, 0)),
                pl.BlockSpec((Cgr, 1), lambda n: (0, 0)),
                pl.BlockSpec((Cin, K * K * Cgr), lambda n: (0, 0)),
                pl.BlockSpec((Cin, 1), lambda n: (0, 0)),
                pl.BlockSpec(memory_space=pltpu.SMEM),
                pl.BlockSpec(memory_space=pltpu.SMEM),
            ],
            out_specs=pl.BlockSpec((1, Cin, M), lambda n: (n, 0, 0)),
            scratch_shapes=[pltpu.VMEM((Cgr, Lext), jnp.float32)],
        ),
        compiler_params=pltpu.CompilerParams(
            dimension_semantics=("parallel",)),
    )(xext, mask, w1cat, b1c, ac, w2cat, b2c, s1r, s2r)

    # crop the 1-pixel halo back off (pure layout plumbing in XLA)
    return out_flat.reshape(N, Cin, Hp, Wp)[:, :, 1:1 + H, 1:1 + W]


def init_params(key, inchannels, growth_rate):
    """Deterministic init mimicking PyTorch defaults (uniform +-1/sqrt(fan_in))."""
    k1, k2, k3, k4 = jax.random.split(key, 4)
    fan1 = inchannels * K * K
    fan2 = growth_rate * K * K
    b1nd = 1.0 / jnp.sqrt(fan1)
    b2nd = 1.0 / jnp.sqrt(fan2)
    # weights stored in HWIO layout: (3, 3, Cin, Cout)
    w1 = jax.random.uniform(k1, (K, K, inchannels, growth_rate),
                            jnp.float32, -b1nd, b1nd)
    b1 = jax.random.uniform(k2, (growth_rate,), jnp.float32, -b1nd, b1nd)
    w2 = jax.random.uniform(k3, (K, K, growth_rate, inchannels),
                            jnp.float32, -b2nd, b2nd)
    b2 = jax.random.uniform(k4, (inchannels,), jnp.float32, -b2nd, b2nd)
    a = jnp.full((growth_rate,), 0.25, jnp.float32)   # PReLU default init
    s1 = jnp.array([1.0], jnp.float32)                # Scale(1)
    s2 = jnp.array([1.0], jnp.float32)                # Scale(1)
    return (w1, b1, a, w2, b2, s1, s2)


def reference_forward(x_nchw, params, relu=True):
    """Pure-JAX reference (for correctness check only)."""
    w1, b1, a, w2, b2, s1, s2 = params
    x = jnp.transpose(x_nchw, (0, 2, 3, 1))  # NHWC
    dn = ('NHWC', 'HWIO', 'NHWC')
    y = lax.conv_general_dilated(x, w1, (1, 1), 'SAME', dimension_numbers=dn) + b1
    if relu:
        y = jnp.where(y > 0, y, y * a)
    z = lax.conv_general_dilated(y, w2, (1, 1), 'SAME', dimension_numbers=dn) + b2
    out = s1[0] * x + s2[0] * z
    return jnp.transpose(out, (0, 3, 1, 2))


if __name__ == "__main__":
    key = jax.random.PRNGKey(0)
    kx, kp = jax.random.split(key)

    N, Cin, H, W = 2, 4, 16, 16
    growth_rate = 8

    x = jax.random.normal(kx, (N, Cin, H, W), jnp.float32)
    params = init_params(kp, Cin, growth_rate)

    out = jax.block_until_ready(one_conv_forward(x, params, relu=True))
    ref = reference_forward(x, params, relu=True)
    assert out.shape == (N, Cin, H, W)
    assert jnp.allclose(out, ref, rtol=1e-4, atol=1e-4), "mismatch vs reference (relu=True)"

    out_nr = jax.block_until_ready(one_conv_forward(x, params, relu=False))
    ref_nr = reference_forward(x, params, relu=False)
    assert jnp.allclose(out_nr, ref_nr, rtol=1e-4, atol=1e-4), "mismatch vs reference (relu=False)"

    print("KERNEL_OK")
</pallas_src>

<mosaic_0001>
module attributes {stable_mosaic.version = 11 : i64} {
  func.func @one_conv_kernel(%arg0: i32, %arg1: memref<1x4x396xf32, #tpu.memory_space<vmem>>, %arg2: memref<1x324xf32, #tpu.memory_space<vmem>>, %arg3: memref<8x36xf32, #tpu.memory_space<vmem>>, %arg4: memref<8x1xf32, #tpu.memory_space<vmem>>, %arg5: memref<8x1xf32, #tpu.memory_space<vmem>>, %arg6: memref<4x72xf32, #tpu.memory_space<vmem>>, %arg7: memref<4x1xf32, #tpu.memory_space<vmem>>, %arg8: memref<1x1xf32, #tpu.memory_space<smem>>, %arg9: memref<1x1xf32, #tpu.memory_space<smem>>, %arg10: memref<1x4x324xf32, #tpu.memory_space<vmem>>, %arg11: memref<8x396xf32, #tpu.memory_space<vmem>>) attributes {dimension_semantics = [#tpu.dimension_semantics<parallel>], iteration_bounds = array<i64: 2>, scalar_prefetch = 0 : i64, scratch_operands = 1 : i64, tpu.core_type = #tpu.core_type<tc>, window_params = [{transform_indices = @transform_0, window_bounds = array<i64: 1, 4, 396>}, {pipeline_mode = #tpu.pipeline_mode<synchronous>, transform_indices = @transform_1, window_bounds = array<i64: 1, 324>}, {pipeline_mode = #tpu.pipeline_mode<synchronous>, transform_indices = @transform_2, window_bounds = array<i64: 8, 36>}, {pipeline_mode = #tpu.pipeline_mode<synchronous>, transform_indices = @transform_3, window_bounds = array<i64: 8, 1>}, {pipeline_mode = #tpu.pipeline_mode<synchronous>, transform_indices = @transform_4, window_bounds = array<i64: 8, 1>}, {pipeline_mode = #tpu.pipeline_mode<synchronous>, transform_indices = @transform_5, window_bounds = array<i64: 4, 72>}, {pipeline_mode = #tpu.pipeline_mode<synchronous>, transform_indices = @transform_6, window_bounds = array<i64: 4, 1>}, {transform_indices = @transform_7, window_bounds = array<i64: 1, 1>}, {transform_indices = @transform_8, window_bounds = array<i64: 1, 1>}, {transform_indices = @transform_9, window_bounds = array<i64: 1, 4, 324>}]} {
    %c0 = arith.constant 0 : index
    %c0_0 = arith.constant 0 : index
    %c17 = arith.constant 17 : index
    %0 = vector.load %arg1[%c0, %c0_0, %c17] : memref<1x4x396xf32, #tpu.memory_space<vmem>>, vector<1x4x324xf32>
    %1 = vector.shape_cast %0 : vector<1x4x324xf32> to vector<4x324xf32>
    %c0_1 = arith.constant 0 : index
    %c0_2 = arith.constant 0 : index
    %c18 = arith.constant 18 : index
    %2 = vector.load %arg1[%c0_1, %c0_2, %c18] : memref<1x4x396xf32, #tpu.memory_space<vmem>>, vector<1x4x324xf32>
    %3 = vector.shape_cast %2 : vector<1x4x324xf32> to vector<4x324xf32>
    %c0_3 = arith.constant 0 : index
    %c0_4 = arith.constant 0 : index
    %c19 = arith.constant 19 : index
    %4 = vector.load %arg1[%c0_3, %c0_4, %c19] : memref<1x4x396xf32, #tpu.memory_space<vmem>>, vector<1x4x324xf32>
    %5 = vector.shape_cast %4 : vector<1x4x324xf32> to vector<4x324xf32>
    %c0_5 = arith.constant 0 : index
    %c0_6 = arith.constant 0 : index
    %c35 = arith.constant 35 : index
    %6 = vector.load %arg1[%c0_5, %c0_6, %c35] : memref<1x4x396xf32, #tpu.memory_space<vmem>>, vector<1x4x324xf32>
    %7 = vector.shape_cast %6 : vector<1x4x324xf32> to vector<4x324xf32>
    %c0_7 = arith.constant 0 : index
    %c0_8 = arith.constant 0 : index
    %c36 = arith.constant 36 : index
    %8 = vector.load %arg1[%c0_7, %c0_8, %c36] : memref<1x4x396xf32, #tpu.memory_space<vmem>>, vector<1x4x324xf32>
    %9 = vector.shape_cast %8 : vector<1x4x324xf32> to vector<4x324xf32>
    %c0_9 = arith.constant 0 : index
    %c0_10 = arith.constant 0 : index
    %c37 = arith.constant 37 : index
    %10 = vector.load %arg1[%c0_9, %c0_10, %c37] : memref<1x4x396xf32, #tpu.memory_space<vmem>>, vector<1x4x324xf32>
    %11 = vector.shape_cast %10 : vector<1x4x324xf32> to vector<4x324xf32>
    %c0_11 = arith.constant 0 : index
    %c0_12 = arith.constant 0 : index
    %c53 = arith.constant 53 : index
    %12 = vector.load %arg1[%c0_11, %c0_12, %c53] : memref<1x4x396xf32, #tpu.memory_space<vmem>>, vector<1x4x324xf32>
    %13 = vector.shape_cast %12 : vector<1x4x324xf32> to vector<4x324xf32>
    %c0_13 = arith.constant 0 : index
    %c0_14 = arith.constant 0 : index
    %c54 = arith.constant 54 : index
    %14 = vector.load %arg1[%c0_13, %c0_14, %c54] : memref<1x4x396xf32, #tpu.memory_space<vmem>>, vector<1x4x324xf32>
    %15 = vector.shape_cast %14 : vector<1x4x324xf32> to vector<4x324xf32>
    %c0_15 = arith.constant 0 : index
    %c0_16 = arith.constant 0 : index
    %c55 = arith.constant 55 : index
    %16 = vector.load %arg1[%c0_15, %c0_16, %c55] : memref<1x4x396xf32, #tpu.memory_space<vmem>>, vector<1x4x324xf32>
    %17 = vector.shape_cast %16 : vector<1x4x324xf32> to vector<4x324xf32>
    %18 = tpu.concatenate %1, %3, %5, %7, %9, %11, %13, %15, %17 in 0 : vector<4x324xf32>, vector<4x324xf32>, vector<4x324xf32>, vector<4x324xf32>, vector<4x324xf32>, vector<4x324xf32>, vector<4x324xf32>, vector<4x324xf32>, vector<4x324xf32> -> vector<36x324xf32>
    %c0_17 = arith.constant 0 : index
    %c0_18 = arith.constant 0 : index
    %19 = vector.load %arg3[%c0_17, %c0_18] : memref<8x36xf32, #tpu.memory_space<vmem>>, vector<8x36xf32>
    %cst = arith.constant dense<0.000000e+00> : vector<8x324xf32>
    %20 = tpu.matmul %19, %18, %cst {dimension_numbers = #tpu.dot_dimension_numbers<[1], [0], [0], [1], [0, 0, 1, 1], [], []>} : vector<8x36xf32>, vector<36x324xf32>, vector<8x324xf32> -> vector<8x324xf32>
    %c0_19 = arith.constant 0 : index
    %c0_20 = arith.constant 0 : index
    %21 = vector.load %arg4[%c0_19, %c0_20] : memref<8x1xf32, #tpu.memory_space<vmem>>, vector<8x1xf32>
    %22 = vector.broadcast %21 : vector<8x1xf32> to vector<8x324xf32>
    %23 = arith.addf %20, %22 : vector<8x324xf32>
    %cst_21 = arith.constant 0.000000e+00 : f32
    %24 = vector.broadcast %cst_21 : f32 to vector<8x324xf32>
    %25 = arith.cmpf ogt, %23, %24 : vector<8x324xf32>
    %c0_22 = arith.constant 0 : index
    %c0_23 = arith.constant 0 : index
    %26 = vector.load %arg5[%c0_22, %c0_23] : memref<8x1xf32, #tpu.memory_space<vmem>>, vector<8x1xf32>
    %27 = vector.broadcast %26 : vector<8x1xf32> to vector<8x324xf32>
    %28 = arith.mulf %23, %27 : vector<8x324xf32>
    %29 = arith.select %25, %23, %28 : vector<8x324xi1>, vector<8x324xf32>
    %c0_24 = arith.constant 0 : index
    %c0_25 = arith.constant 0 : index
    %30 = vector.load %arg2[%c0_24, %c0_25] : memref<1x324xf32, #tpu.memory_space<vmem>>, vector<1x324xf32>
    %31 = vector.broadcast %30 : vector<1x324xf32> to vector<8x324xf32>
    %32 = arith.mulf %29, %31 : vector<8x324xf32>
    %cst_26 = arith.constant 0.000000e+00 : f32
    %33 = vector.broadcast %cst_26 : f32 to vector<8x36xf32>
    %c0_27 = arith.constant 0 : index
    %c0_28 = arith.constant 0 : index
    %34 = vector.load %arg11[%c0_27, %c0_28] : memref<8x396xf32, #tpu.memory_space<vmem>>, vector<8x36xf32>
    tpu.vector_store %arg11[%c0_27, %c0_28], %33 {strides = array<i32>} : memref<8x396xf32, #tpu.memory_space<vmem>>, vector<8x36xf32>,
    %cst_29 = arith.constant 0.000000e+00 : f32
    %35 = vector.broadcast %cst_29 : f32 to vector<8x36xf32>
    %c0_30 = arith.constant 0 : index
    %c360 = arith.constant 360 : index
    %36 = vector.load %arg11[%c0_30, %c360] : memref<8x396xf32, #tpu.memory_space<vmem>>, vector<8x36xf32>
    tpu.vector_store %arg11[%c0_30, %c360], %35 {strides = array<i32>} : memref<8x396xf32, #tpu.memory_space<vmem>>, vector<8x36xf32>,
    %c0_31 = arith.constant 0 : index
    %c36_32 = arith.constant 36 : index
    %37 = vector.load %arg11[%c0_31, %c36_32] : memref<8x396xf32, #tpu.memory_space<vmem>>, vector<8x324xf32>
    tpu.vector_store %arg11[%c0_31, %c36_32], %32 {strides = array<i32>} : memref<8x396xf32, #tpu.memory_space<vmem>>, vector<8x324xf32>,
    %c0_33 = arith.constant 0 : index
    %c17_34 = arith.constant 17 : index
    %38 = vector.load %arg11[%c0_33, %c17_34] : memref<8x396xf32, #tpu.memory_space<vmem>>, vector<8x324xf32>
    %c0_35 = arith.constant 0 : index
    %c18_36 = arith.constant 18 : index
    %39 = vector.load %arg11[%c0_35, %c18_36] : memref<8x396xf32, #tpu.memory_space<vmem>>, vector<8x324xf32>
    %c0_37 = arith.constant 0 : index
    %c19_38 = arith.constant 19 : index
    %40 = vector.load %arg11[%c0_37, %c19_38] : memref<8x396xf32, #tpu.memory_space<vmem>>, vector<8x324xf32>
    %c0_39 = arith.constant 0 : index
    %c35_40 = arith.constant 35 : index
    %41 = vector.load %arg11[%c0_39, %c35_40] : memref<8x396xf32, #tpu.memory_space<vmem>>, vector<8x324xf32>
    %c0_41 = arith.constant 0 : index
    %c36_42 = arith.constant 36 : index
    %42 = vector.load %arg11[%c0_41, %c36_42] : memref<8x396xf32, #tpu.memory_space<vmem>>, vector<8x324xf32>
    %c0_43 = arith.constant 0 : index
    %c37_44 = arith.constant 37 : index
    %43 = vector.load %arg11[%c0_43, %c37_44] : memref<8x396xf32, #tpu.memory_space<vmem>>, vector<8x324xf32>
    %c0_45 = arith.constant 0 : index
    %c53_46 = arith.constant 53 : index
    %44 = vector.load %arg11[%c0_45, %c53_46] : memref<8x396xf32, #tpu.memory_space<vmem>>, vector<8x324xf32>
    %c0_47 = arith.constant 0 : index
    %c54_48 = arith.constant 54 : index
    %45 = vector.load %arg11[%c0_47, %c54_48] : memref<8x396xf32, #tpu.memory_space<vmem>>, vector<8x324xf32>
    %c0_49 = arith.constant 0 : index
    %c55_50 = arith.constant 55 : index
    %46 = vector.load %arg11[%c0_49, %c55_50] : memref<8x396xf32, #tpu.memory_space<vmem>>, vector<8x324xf32>
    %47 = tpu.concatenate %38, %39, %40, %41, %42, %43, %44, %45, %46 in 0 : vector<8x324xf32>, vector<8x324xf32>, vector<8x324xf32>, vector<8x324xf32>, vector<8x324xf32>, vector<8x324xf32>, vector<8x324xf32>, vector<8x324xf32>, vector<8x324xf32> -> vector<72x324xf32>
    %c0_51 = arith.constant 0 : index
    %c0_52 = arith.constant 0 : index
    %48 = vector.load %arg6[%c0_51, %c0_52] : memref<4x72xf32, #tpu.memory_space<vmem>>, vector<4x72xf32>
    %cst_53 = arith.constant dense<0.000000e+00> : vector<4x324xf32>
    %49 = tpu.matmul %48, %47, %cst_53 {dimension_numbers = #tpu.dot_dimension_numbers<[1], [0], [0], [1], [0, 0, 1, 1], [], []>} : vector<4x72xf32>, vector<72x324xf32>, vector<4x324xf32> -> vector<4x324xf32>
    %c0_54 = arith.constant 0 : index
    %c0_55 = arith.constant 0 : index
    %50 = vector.load %arg7[%c0_54, %c0_55] : memref<4x1xf32, #tpu.memory_space<vmem>>, vector<4x1xf32>
    %51 = vector.broadcast %50 : vector<4x1xf32> to vector<4x324xf32>
    %52 = arith.addf %49, %51 : vector<4x324xf32>
    %c0_56 = arith.constant 0 : index
    %c0_57 = arith.constant 0 : index
    %c36_58 = arith.constant 36 : index
    %53 = vector.load %arg1[%c0_56, %c0_57, %c36_58] : memref<1x4x396xf32, #tpu.memory_space<vmem>>, vector<1x4x324xf32>
    %54 = vector.shape_cast %53 : vector<1x4x324xf32> to vector<4x324xf32>
    %c0_59 = arith.constant 0 : index
    %c0_60 = arith.constant 0 : index
    %55 = memref.load %arg8[%c0_59, %c0_60] : memref<1x1xf32, #tpu.memory_space<smem>>
    %56 = vector.broadcast %55 : f32 to vector<4x324xf32>
    %57 = arith.mulf %56, %54 : vector<4x324xf32>
    %c0_61 = arith.constant 0 : index
    %c0_62 = arith.constant 0 : index
    %58 = memref.load %arg9[%c0_61, %c0_62] : memref<1x1xf32, #tpu.memory_space<smem>>
    %59 = vector.broadcast %58 : f32 to vector<4x324xf32>
    %60 = arith.mulf %59, %52 : vector<4x324xf32>
    %61 = arith.addf %57, %60 : vector<4x324xf32>
    %c0_63 = arith.constant 0 : index
    %c0_64 = arith.constant 0 : index
    %c0_65 = arith.constant 0 : index
    %62 = vector.load %arg10[%c0_63, %c0_64, %c0_65] : memref<1x4x324xf32, #tpu.memory_space<vmem>>, vector<1x4x324xf32>
    %63 = vector.shape_cast %62 : vector<1x4x324xf32> to vector<4x324xf32>
    %64 = vector.shape_cast %61 : vector<4x324xf32> to vector<1x4x324xf32>
    tpu.vector_store %arg10[%c0_63, %c0_64, %c0_65], %64 {strides = array<i32>} : memref<1x4x324xf32, #tpu.memory_space<vmem>>, vector<1x4x324xf32>,
    return
  }
  func.func @transform_0(%arg0: i32) -> (i32, i32, i32) {
    %c0_i32 = arith.constant 0 : i32
    %c0_i32_0 = arith.constant 0 : i32
    %c0_i32_1 = arith.constant 0 : i32
    return %arg0, %c0_i32, %c0_i32_0 : i32, i32, i32
  }
  func.func @transform_1(%arg0: i32) -> (i32, i32) {
    %c0_i32 = arith.constant 0 : i32
    %c0_i32_0 = arith.constant 0 : i32
    %c0_i32_1 = arith.constant 0 : i32
    return %c0_i32, %c0_i32_0 : i32, i32
  }
  func.func @transform_2(%arg0: i32) -> (i32, i32) {
    %c0_i32 = arith.constant 0 : i32
    %c0_i32_0 = arith.constant 0 : i32
    %c0_i32_1 = arith.constant 0 : i32
    return %c0_i32, %c0_i32_0 : i32, i32
  }
  func.func @transform_3(%arg0: i32) -> (i32, i32) {
    %c0_i32 = arith.constant 0 : i32
    %c0_i32_0 = arith.constant 0 : i32
    %c0_i32_1 = arith.constant 0 : i32
    return %c0_i32, %c0_i32_0 : i32, i32
  }
  func.func @transform_4(%arg0: i32) -> (i32, i32) {
    %c0_i32 = arith.constant 0 : i32
    %c0_i32_0 = arith.constant 0 : i32
    %c0_i32_1 = arith.constant 0 : i32
    return %c0_i32, %c0_i32_0 : i32, i32
  }
  func.func @transform_5(%arg0: i32) -> (i32, i32) {
    %c0_i32 = arith.constant 0 : i32
    %c0_i32_0 = arith.constant 0 : i32
    %c0_i32_1 = arith.constant 0 : i32
    return %c0_i32, %c0_i32_0 : i32, i32
  }
  func.func @transform_6(%arg0: i32) -> (i32, i32) {
    %c0_i32 = arith.constant 0 : i32
    %c0_i32_0 = arith.constant 0 : i32
    %c0_i32_1 = arith.constant 0 : i32
    return %c0_i32, %c0_i32_0 : i32, i32
  }
  func.func @transform_7(%arg0: i32) -> (i32, i32) {
    %c0_i32 = arith.constant 0 : i32
    %c0_i32_0 = arith.constant 0 : i32
    %c0_i32_1 = arith.constant 0 : i32
    return %c0_i32, %c0_i32_0 : i32, i32
  }
  func.func @transform_8(%arg0: i32) -> (i32, i32) {
    %c0_i32 = arith.constant 0 : i32
    %c0_i32_0 = arith.constant 0 : i32
    %c0_i32_1 = arith.constant 0 : i32
    return %c0_i32, %c0_i32_0 : i32, i32
  }
  func.func @transform_9(%arg0: i32) -> (i32, i32, i32) {
    %c0_i32 = arith.constant 0 : i32
    %c0_i32_0 = arith.constant 0 : i32
    %c0_i32_1 = arith.constant 0 : i32
    return %arg0, %c0_i32, %c0_i32_0 : i32, i32, i32
  }
}

</mosaic_0001>

<bundles_post_ra>
// kernel: tpu_custom_call.1
= control target key start
LH: loop header
LB: loop body
LE: loop exit
PB: predicated region body
PF: predicated region fallthrough
CT: control target
= control target key end

     0   :  { %s1872_s0 = inlined_call_operand.hbm [shape: f32[2,4,396], index: 0, kind: input, shape index: {}]   ;;  %s1873_s1 = inlined_call_operand.vmem [shape: f32[1,324], index: 1, kind: input, shape index: {}]   ;;  %s1874_s2 = inlined_call_operand.vmem [shape: f32[8,36], index: 2, kind: input, shape index: {}]   ;;  %s1875_s3 = inlined_call_operand.vmem [shape: f32[8,1], index: 3, kind: input, shape index: {}]   ;;  %s1876_s4 = inlined_call_operand.vmem [shape: f32[8,1], index: 4, kind: input, shape index: {}]   ;;  %s1877_s5 = inlined_call_operand.vmem [shape: f32[4,72], index: 5, kind: input, shape index: {}]   ;;  %s1878_s6 = inlined_call_operand.vmem [shape: f32[4,1], index: 6, kind: input, shape index: {}]   ;;  %s1879_s7 = inlined_call_operand.<no memory space> [shape: f32[1,1], index: 7, kind: input, shape index: {}]   ;;  %s1880_s8 = inlined_call_operand.<no memory space> [shape: f32[1,1], index: 8, kind: input, shape index: {}]   ;;  %s1881_s9 = inlined_call_operand.hbm [shape: f32[2,4,324], index: 9, kind: output, shape index: {}]  }
   0x1   :  { %14 = sst [smem:[#allocation3]] %s1879_s7 }
   0x2   :  { %15 = sst [smem:[#allocation4]] %s1880_s8 }
   0x3   :  { %16 = vsyncpa [#allocation6], 0 }
   0x4   :  { %18 = vsyncpa [#allocation6 + $0x1], 0 }
   0x5   :  { %19 = vsyncpa [#allocation7], 0 }
   0x6   :  { %21 = vsyncpa [#allocation7 + $0x1], 0  ;;  %s1504_s13 = smov 0   ;;  %s1506_s14 = smov 0  }
   0x7   :  { %s1508_s15 = smov 0   ;;  %s1510_s16 = smov 0  }
   0x8 LB: > { %s1525_s7 = sadd.s32 4294967295, %s1434_s16   ;;  %s1085_s8 = sadd.s32 4294967294, %s1434_s16   ;;  %s1434_s16 = sphi %s1510_s16, %s1893_s16   ;;  %s1430_s15 = sphi %s1508_s15, %s1892_s15   ;;  %s1426_s14 = sphi %s1506_s14, %s1891_s14   ;;  %s1422_s13 = sphi %s1504_s13, %s1890_s13  }
   0x9   : > { %s1529_s17 = sadd.s32 1, %s1434_s16   ;;  %s34_s18 = sadd.s32 1, %s1430_s15 }
   0xa   : > { %s31_s19 = ssub.s32 %s1434_s16, %s1529_s17  ;;  %p41_p0 = scmp.ne.s32.totalorder %s1430_s15, %s1426_s14 }
   0xb   : > { %p32_p1 = scmp.eq.s32.totalorder %s31_s19, 0  ;;  %p42_p2 = scmp.eq.s32.totalorder %s1434_s16, 0 }
   0xc   : > { %p47_p3 = scmp.ne.s32.totalorder %s1426_s14, %s1422_s13  ;;  %p48_p4 = scmp.eq.s32.totalorder %s1525_s7, 0 }
   0xd   : > { %s1541_s20 = scalar_select %p32_p1, %s1430_s15, %s34_s18  }
   0xe   : > { %p1543_p5 = por %p42_p2, %p41_p0  ;;  %p1547_p6 = por %p48_p4, %p47_p3 }
   0xf   : > { %1882 = sst [smem:[#allocation11_spill]] %s1541_s20  ;;  %p239_p7 = scmp.eq.s32.totalorder %s1525_s7, 1 }
  0x10   : > { %p245_p8 = scmp.eq.s32.totalorder %s1085_s8, 1  ;;  %p1120_p10 = scmp.lt.s32.totalorder %s1434_s16, 2 }
  0x11   : > { %p1554_p11 = por %p239_p7, %p41_p0  ;;  %s289_s25 = sand.u32 1, %s1430_s15  }
  0x12   : > { %p1558_p12 = por %p245_p8, %p47_p3  ;;  %s1105_s26 = sshll.u32 %s1434_s16, 4 }
  0x13   : > { %s1088_s27 = sshll.u32 %s289_s25, 4  ;;  %s298_s30 = scalar_lea.hbm %s1872_s0, %s1105_s26 }
  0x14   : > { %s300_s10 = sshll.u32 %s298_s30, 4  ;;  %s293_s11 = scalar_lea.vmem [#allocation5], %s1088_s27  ;;  %s301_s10 = int_to_ptr.hbm [resolvable:$true] %s300_s10 }
  0x15   : > { %s302_s12 = sshll.u32 %s293_s11, 4  ;;  %p1569_p13 = pnand %p1120_p10, %p1543_p5  ;;  %s303_s12 = int_to_ptr.vmem [resolvable:$true] %s302_s12 }
  0x16   : > { %p1091_p0 = scmp.ge.s32.totalorder %s1434_s16, 1  ;;  %p307_p1 = scmp.lt.s32.totalorder %s1434_s16, 3 }
  0x17   : > { %s290_s18 = scalar_lea.sflag [#allocation6], %s289_s25  ;;  %s1338_s19 = sshra.s32 %s301_s10, 4  ;;  %s1339_s19 = int_to_ptr.hbm [resolvable:$true] %s1338_s19 }
  0x18   : > { %s1340_s20 = scalar_lea.hbm %s1339_s19, 16  ;;  %p1342_p3 = pneg %p1569_p13 }
  0x19   : > { %p1341_p2 = scmp.ne.s32.totalorder %s1339_s19, %s1340_s20  ;;  %s1345_s21 = scalar_lea.hbm %s1872_s0, 32 }
  0x1a   : > { %p1346_p5 = scmp.lt.s32.totalorder %s1339_s19, %s1872_s0  ;;  %p1347_p8 = scmp.lt.s32.totalorder %s1345_s21, %s1340_s20 }
  0x1b   : > { %p1343_p4 = pnand %p1342_p3, %p1341_p2 }
  0x1c   : > { %p1348_p10 = por %p1347_p8, %p1346_p5 }
  0x1d   : > { %p1344_p7 = pneg %p1343_p4 }
  0x1f   : > { %p1349_p9 = pnand %p1348_p10, %p1344_p7 }
  0x21   : > { %1352 = shalt.err (!%p1349_p9)
}
  0x22   : > { %1115 = dma.hbm_to_vmem [thread:$0]  (!%p1569_p13), %s301_s10, 256, %s303_s12, %s290_s18  }
  0x23   : > { %p308_p2 = pnand %p1091_p0, %p307_p1 }
  0x24   : > { %s1590_s25 = sand.u32 (!%p308_p2), 1, %s1426_s14  }
  0x25   : > { %311 = sbr.rel (%p308_p2) target bundleno = 1300 (0x514), region = 56  ;;  %s1092_s30 = sshll.u32 (!%p308_p2), %s1590_s25, 4 }
  0x26   : > { %s314_s20 = scalar_lea.sflag (!%p308_p2), [#allocation6], %s1590_s25  ;;  %s1594_s11 = scalar_lea.vmem (!%p308_p2), [#allocation5], %s1092_s30 }
  0x2a   : > { %1413 = dma.done.wait (%p1547_p6), %s314_s20, 256  }
  0x2b   : > { %1415 = vsyncadd (%p1547_p6), %s314_s20, 4294967040  ;;  %v1601_v0 = vld [vmem:[%s1594_s11] sm:$0xff]  ;;  %v354_v1 = vld [vmem:[%s1594_s11 + $0x8] sm:$0xf]  ;;  %s1436_s22 = smov 126   ;;  %s1437_s10 = smov 110  }
  0x2c   : > { %357 = vst [vmem:[#allocation1] ss:$2 sm:$0xff] %v1601_v0  ;;  %s1438_s12 = smov 109   ;;  %s1439_s8 = smov 108   ;;  %vm471_vm0 = vcmask 752640   ;;  %vm490_vm1 = vcmask 744448  }
  0x2d   : > { %359 = vst [vmem:[#allocation1 + $0x10] ss:$2 sm:$0xff] %v354_v1  ;;  %s1440_s18 = smov 92   ;;  %s1441_s19 = smov 91   ;;  %vm511_vm2 = vcmask 1043456   ;;  %vm416_vm3 = vcmask 900096  }
  0x2e   : > { %s1442_s26 = smov 90   ;;  %s1443_s27 = smov 127   ;;  %vm434_vm4 = vcmask 891904   ;;  %vm508_vm5 = vcmask 736256   ;;  %vm397_vm6 = vcmask 1031168   ;;  %vm453_vm7 = vcmask 883712  }
  0x2f   : > { %s1444_s21 = smov 111   ;;  %vm379_vm8 = vcmask 1039360   ;;  %vm573_vm9 = vcmask 908288   ;;  %vm596_vm10 = vcmask 293888   ;;  %s1446_s28 = smov 36   ;;  %vm693_vm14 = vcmask 1048384  }
  0x30   : > { %vm711_vm15 = vcmask 1047840  }
  0x33   : > { %v1605_v2 = vld.sshfl [vmem:[#allocation1] sm:$0xff pattern:$0x75316420]  ;;  %v1607_v3 = vld.sshfl [vmem:[#allocation1 + $0x8] sm:$0xff pattern:$0x75316420] }
  0x34   : > { %367 = vst [vmem:[#allocation1 + $0x1] ss:$2 sm:$0xff] %v1601_v0  ;;  %v1610_v4 = vld.sshfl [vmem:[#allocation1 + $0x10] sm:$0xff pattern:$0x75316420] }
  0x35   : > { %369 = vst [vmem:[#allocation1 + $0x11] ss:$2 sm:$0xff] %v354_v1 }
  0x3b   : > { %v1612_v5 = vld.sshfl [vmem:[#allocation1] sm:$0xff pattern:$0x75316420]  ;;  %v1614_v6 = vld.sshfl [vmem:[#allocation1 + $0x8] sm:$0xff pattern:$0x75316420] }
  0x3c   : > { %385 = vst [vmem:[#allocation1] ss:$2 sm:$0xff] %v1601_v0  ;;  %v1617_v7 = vld.sshfl [vmem:[#allocation1 + $0x10] sm:$0xff pattern:$0x75316420]  ;;  %v1196_v24 = vpack.i.bf16 %v1614_v6, %v1612_v5 }
  0x3d   : > { %387 = vst [vmem:[#allocation1 + $0x10] ss:$2 sm:$0xff] %v354_v1 }
  0x43   : > { %v388_v8 = vld.sshfl [vmem:[#allocation1] sm:$0xff pattern:$0x75316420]  ;;  %v389_v9 = vld.sshfl [vmem:[#allocation1 + $0x8] sm:$0xff pattern:$0x75316420] }
  0x44   : > { %404 = vst [vmem:[#allocation1 + $0x1] ss:$2 sm:$0xff] %v1601_v0  ;;  %v1166_v10 = vpack.i.bf16 %v389_v9, %v388_v8  ;;  %v390_v11 = vld.sshfl [vmem:[#allocation1 + $0x10] sm:$0xff pattern:$0x75316420] }
  0x45   : > { %395 = vrot.lane.b32.xlu0 %v390_v11, %s1436_s22  ;;  %406 = vst [vmem:[#allocation1 + $0x11] ss:$2 sm:$0xff] %v354_v1 }
  0x46   : > { %1167 = vrot.lane.b32.xlu2 %v1166_v10, %s1436_s22 }
  0x4b   : > { %v407_v12 = vld.sshfl [vmem:[#allocation1] sm:$0xff pattern:$0x75316420]  ;;  %v408_v13 = vld.sshfl [vmem:[#allocation1 + $0x8] sm:$0xff pattern:$0x75316420] }
  0x4c   : > { %v1171_v14 = vpack.i.bf16 %v408_v13, %v407_v12  ;;  %422 = vst [vmem:[#allocation1] ss:$2 sm:$0xff] %v1601_v0  ;;  %v409_v15 = vld.sshfl [vmem:[#allocation1 + $0x10] sm:$0xff pattern:$0x75316420] }
  0x4d   : > { %424 = vst [vmem:[#allocation1 + $0x10] ss:$2 sm:$0xff] %v354_v1 }
  0x4e   : > { %1172 = vrot.lane.b32.xlu1 %v1171_v14, %s1437_s10 }
  0x53   : > { %v425_v16 = vld.sshfl [vmem:[#allocation1] sm:$0xff pattern:$0x75316420]  ;;  %v426_v17 = vld.sshfl [vmem:[#allocation1 + $0x8] sm:$0xff pattern:$0x75316420] }
  0x54   : > { %v1176_v18 = vpack.i.bf16 %v426_v17, %v425_v16  ;;  %441 = vst [vmem:[#allocation1 + $0x1] ss:$2 sm:$0xff] %v1601_v0  ;;  %v427_v19 = vld.sshfl [vmem:[#allocation1 + $0x10] sm:$0xff pattern:$0x75316420] }
  0x55   : > { %443 = vst [vmem:[#allocation1 + $0x11] ss:$2 sm:$0xff] %v354_v1  ;;  %432 = vrot.lane.b32.xlu2 %v427_v19, %s1438_s12 }
  0x56   : > { %1177 = vrot.lane.b32.xlu1 %v1176_v18, %s1438_s12 }
  0x5b   : > { %v444_v20 = vld.sshfl [vmem:[#allocation1] sm:$0xff pattern:$0x75316420]  ;;  %v445_v21 = vld.sshfl [vmem:[#allocation1 + $0x8] sm:$0xff pattern:$0x75316420] }
  0x5c   : > { %v446_v22 = vld.sshfl [vmem:[#allocation1 + $0x10] sm:$0xff pattern:$0x75316420]  ;;  %v1181_v23 = vpack.i.bf16 %v445_v21, %v444_v20  ;;  %459 = vst [vmem:[#allocation1] ss:$2 sm:$0xff] %v1601_v0 }
  0x5d   : > { %461 = vst [vmem:[#allocation1 + $0x10] ss:$2 sm:$0xff] %v354_v1 }
  0x5e   : > { %451 = vrot.lane.b32.xlu1 %v446_v22, %s1439_s8  ;;  %1182 = vrot.lane.b32.xlu0 %v1181_v23, %s1439_s8 }
  0x63   : > { %v462_v25 = vld.sshfl [vmem:[#allocation1] sm:$0xff pattern:$0x75316420]  ;;  %v463_v26 = vld.sshfl [vmem:[#allocation1 + $0x8] sm:$0xff pattern:$0x75316420] }
  0x64   : > { %v464_v27 = vld.sshfl [vmem:[#allocation1 + $0x10] sm:$0xff pattern:$0x75316420]  ;;  %v1186_v28 = vpack.i.bf16 %v463_v26, %v462_v25  ;;  %478 = vst [vmem:[#allocation1 + $0x1] ss:$2 sm:$0xff] %v1601_v0 }
  0x65   : > { %480 = vst [vmem:[#allocation1 + $0x11] ss:$2 sm:$0xff] %v354_v1  ;;  %469 = vrot.lane.b32.xlu2 %v464_v27, %s1440_s18 }
  0x66   : > { %1187 = vrot.lane.b32.xlu1 %v1186_v28, %s1440_s18 }
  0x6b   : > { %v481_v29 = vld.sshfl [vmem:[#allocation1] sm:$0xff pattern:$0x75316420]  ;;  %v482_v30 = vld.sshfl [vmem:[#allocation1 + $0x8] sm:$0xff pattern:$0x75316420] }
  0x6c   : > { %v483_v31 = vld.sshfl [vmem:[#allocation1 + $0x10] sm:$0xff pattern:$0x75316420]  ;;  %v1191_v32 = vpack.i.bf16 %v482_v30, %v481_v29  ;;  %496 = vst [vmem:[#allocation1] ss:$2 sm:$0xff] %v1601_v0 }
  0x6d   : > { %498 = vst [vmem:[#allocation1 + $0x10] ss:$2 sm:$0xff] %v354_v1  ;;  %488 = vrot.lane.b32.xlu0 %v483_v31, %s1441_s19 }
  0x6e   : > { %1192 = vrot.lane.b32.xlu2 %v1191_v32, %s1441_s19 }
  0x73   : > { %v499_v33 = vld.sshfl [vmem:[#allocation1] sm:$0xff pattern:$0x75316420]  ;;  %v500_v35 = vld.sshfl [vmem:[#allocation1 + $0x8] sm:$0xff pattern:$0x75316420] }
  0x74   : > { %v501_v34 = vld.sshfl [vmem:[#allocation1 + $0x10] sm:$0xff pattern:$0x75316420] }
  0x75   : > { %506 = vrot.lane.b32.xlu1 %v501_v34, %s1442_s26  ;;  %502 = vrot.lane.b32.xlu0 %v499_v33, %s1442_s26 }
  0x76   : > { %414 = vrot.lane.b32.xlu2 %v409_v15, %s1437_s10 }
  0x7d   : > { %377 = vrot.lane.b32.xlu1 %v1617_v7, %s1443_s27  ;;  %504 = vrot.lane.b32.xlu0 %v500_v35, %s1442_s26 }
  0x85   : > { %1197 = vrot.lane.b32.xlu0 %v1196_v24, %s1443_s27 }
  0xa0   : > { %v1168_v36 = vpop.permute.xlu2 %1167 }
  0xa1   : > { %v1169_v59 = vunpack.i.l.bf16 %v1168_v36  ;;  %v1170_v62 = vunpack.i.h.bf16 %v1168_v36 }
  0xa3   : > { %v398_v10 = vsel %vm397_vm6, %v1169_v59, %v1170_v62 }
  0xaf   : > { %v1645_v38 = vpop.permute.xlu2 %432 }
  0xb7   : > { %v1647_v40 = vpop.permute.xlu0 %395 }
  0xb8   : > { %v399_v19 = vsel %vm397_vm6, %v1170_v62, %v1647_v40 }
  0xbf   : > { %v1649_v41 = vpop.permute.xlu2 %469 }
  0xc0   : > { %v1173_v37 = vpop.permute.xlu1 %1172 }
  0xc1   : > { %v1175_v60 = vunpack.i.h.bf16 %v1173_v37  ;;  %v1174_v61 = vunpack.i.l.bf16 %v1173_v37 }
  0xc3   : > { %v417_v11 = vsel %vm416_vm3, %v1174_v61, %v1175_v60  ;;  %v524_v61 = vld [vmem:[%s1874_s2] sm:$0xff] }
  0xc4   : > { %v515_v21 = vsel %vm511_vm2, %v398_v10, %v417_v11 }
  0xc8   : > { %v1178_v39 = vpop.permute.xlu1 %1177  ;;  %v1193_v44 = vpop.permute.xlu2 %1192 }
  0xc9   : > { %v1195_v45 = vunpack.i.h.bf16 %v1193_v44  ;;  %v1194_v46 = vunpack.i.l.bf16 %v1193_v44  ;;  %v1180_v63 = vunpack.i.h.bf16 %v1178_v39  ;;  %v1179_v1 = vunpack.i.l.bf16 %v1178_v39 }
  0xca   : > { %v1445_v44 = vmov 0  }
  0xcb   : > { %v491_v51 = vsel %vm490_vm1, %v1194_v46, %v1195_v45  ;;  %v436_v12 = vsel %vm434_vm4, %v1180_v63, %v1645_v38  ;;  %v435_v13 = vsel %vm434_vm4, %v1179_v1, %v1180_v63  ;;  %1232 = vset.pattern.permute.xlu0 %v1445_v44  ;;  %1231 = vset.pattern.permute.xlu2 %v1445_v44 }
  0xd0   : > { %v1651_v42 = vpop.permute.xlu1 %451  ;;  %v1183_v43 = vpop.permute.xlu0 %1182 }
  0xd1   : > { %v1185_v5 = vunpack.i.h.bf16 %v1183_v43  ;;  %v1184_v6 = vunpack.i.l.bf16 %v1183_v43  ;;  %v415_v7 = vpop.permute.xlu2 %414  ;;  %v520_v34 = vsel %vm511_vm2, %v1645_v38, %v1651_v42  ;;  %v669_v43 = vld [vmem:[%s1876_s4] sm:$0xff] }
  0xd2   : > { %v418_v16 = vsel %vm416_vm3, %v1175_v60, %v415_v7 }
  0xd3   : > { %v455_v17 = vsel %vm453_vm7, %v1185_v5, %v1651_v42  ;;  %v454_v18 = vsel %vm453_vm7, %v1184_v6, %v1185_v5  ;;  %v516_v20 = vsel %vm511_vm2, %v399_v19, %v418_v16 }
  0xd4   : > { %v518_v22 = vsel %vm511_vm2, %v435_v13, %v454_v18  ;;  %v519_v23 = vsel %vm511_vm2, %v436_v12, %v455_v17  ;;  %v1211_v25 = vpack.i.bf16 %v516_v20, %v515_v21 }
  0xd5   : > { %v1206_v26 = vpack.i.bf16 %v519_v23, %v518_v22 }
  0xd8   : > { %v1188_v47 = vpop.permute.xlu1 %1187 }
  0xd9   : > { %v1190_v48 = vunpack.i.h.bf16 %v1188_v47  ;;  %v1189_v49 = vunpack.i.l.bf16 %v1188_v47 }
  0xdb   : > { %v472_v50 = vsel %vm471_vm0, %v1189_v49, %v1190_v48  ;;  %v473_v52 = vsel %vm471_vm0, %v1190_v48, %v1649_v41 }
  0xdc   : > { %v521_v54 = vsel %vm511_vm2, %v472_v50, %v491_v51 }
  0xdf   : > { %v489_v53 = vpop.permute.xlu0 %488 }
  0xe0   : > { %v492_v55 = vsel %vm490_vm1, %v1195_v45, %v489_v53  ;;  %v523_v35 = vsel %vm511_vm2, %v1649_v41, %v489_v53 }
  0xe1   : > { %v522_v56 = vsel %vm511_vm2, %v473_v52, %v492_v55  ;;  %v1221_v37 = vpack.i.bf16 %v520_v34, %v523_v35  ;;  %v1447_v34 = vmov 0.0  }
  0xe2   : > { %v1201_v57 = vpack.i.bf16 %v522_v56, %v521_v54  ;;  %692 = vst.msk [vmem:[#allocation2] sm:$0xff] %vm596_vm10, %v1447_v34 }
  0xe3   : > { %694 = vst.msk [vmem:[#allocation2 + $0x10] sm:$0xff] %vm693_vm14, %v1447_v34 }
  0xe4   : > { %1202 = vrot.lane.b32.xlu1 %v1201_v57, %s1444_s21 }
  0xe7   : > { %v503_v58 = vpop.permute.xlu0 %502  ;;  %v507_v8 = vpop.permute.xlu1 %506 }
  0xef   : > { %v505_v9 = vpop.permute.xlu0 %504  ;;  %v378_v29 = vpop.permute.xlu1 %377 }
  0xf0   : > { %v510_v14 = vsel %vm508_vm5, %v505_v9, %v507_v8  ;;  %v509_v15 = vsel %vm508_vm5, %v503_v58, %v505_v9  ;;  %v514_v39 = vsel %vm511_vm2, %v1610_v4, %v378_v29  ;;  %v525_v4 = vld [vmem:[%s1875_s3] sm:$0xff] }
  0xf1   : > { %569 = vrot.lane.b32.xlu0 %v510_v14, %s1444_s21  ;;  %567 = vrot.lane.b32.xlu2 %v509_v15, %s1444_s21  ;;  %v681_v14 = vld [vmem:[%s1873_s1] sm:$0x7] }
  0xf2   : > { %v683_v18 = vperm.slane %v681_v14, 0 }
  0xf7   : > { %v1198_v24 = vpop.permute.xlu0 %1197 }
  0xf8   : > { %v1200_v27 = vunpack.i.h.bf16 %v1198_v24  ;;  %v1199_v28 = vunpack.i.l.bf16 %v1198_v24  ;;  %v684_v24 = vperm.slane %v681_v14, 1 }
  0xf9   : > { %1212 = vrot.lane.b32.xlu0 %v1211_v25, %s1444_s21  ;;  %1207 = vrot.lane.b32.xlu2 %v1206_v26, %s1444_s21 }
  0xfa   : > { %v381_v30 = vsel %vm379_vm8, %v1200_v27, %v378_v29  ;;  %v380_v31 = vsel %vm379_vm8, %v1199_v28, %v1200_v27 }
  0xfb   : > { %v512_v32 = vsel %vm511_vm2, %v1605_v2, %v380_v31  ;;  %v513_v33 = vsel %vm511_vm2, %v1607_v3, %v381_v30  ;;  %v517_v2 = vsel %vm511_vm2, %v1647_v40, %v415_v7  ;;  %v685_v30 = vperm.slane %v681_v14, 2 }
  0xfc   : > { %v1216_v36 = vpack.i.bf16 %v513_v33, %v512_v32  ;;  %v1226_v3 = vpack.i.bf16 %v514_v39, %v517_v2 }
  0xfe   : > { %1217 = vrot.lane.b32.xlu1 %v1216_v36, %s1444_s21 }
 0x101   : > { %1222 = vrot.lane.b32.xlu0 %v1221_v37, %s1444_s21  ;;  %571 = vrot.lane.b32.xlu2 %v507_v8, %s1444_s21 }
 0x106   : > { %1227 = vrot.lane.b32.xlu1 %v1226_v3, %s1444_s21 }
 0x109   : > { %672 = vperm.xlu0 %1232, %v669_v43   ;;  %528 = vperm.xlu2 %1231, %v525_v4  }
 0x14b   : > { %v568_v38 = vpop.permute.xlu2 %567 }
 0x153   : > { %v1208_v42 = vpop.permute.xlu2 %1207 }
 0x154   : > { %v1210_v48 = vunpack.i.h.bf16 %v1208_v42  ;;  %v1209_v49 = vunpack.i.l.bf16 %v1208_v42 }
 0x156   : > { %v1203_v41 = vpop.permute.xlu1 %1202  ;;  %v578_v53 = vsel %vm573_vm9, %v1209_v49, %v1210_v48 }
 0x157   : > { %v1205_v40 = vunpack.i.h.bf16 %v1203_v41  ;;  %v1204_v45 = vunpack.i.l.bf16 %v1203_v41 }
 0x159   : > { %v580_v52 = vsel %vm573_vm9, %v1204_v45, %v1205_v40 }
 0x15b   : > { %v572_v46 = vpop.permute.xlu2 %571 }
 0x163   : > { %v570_v47 = vpop.permute.xlu0 %569  ;;  %v529_v13 = vpop.permute.xlu2 %528 }
 0x164   : > { %v582_v50 = vsel %vm573_vm9, %v568_v38, %v570_v47  ;;  %v583_v51 = vsel %vm573_vm9, %v570_v47, %v572_v46 }
 0x165   : > { %1093 = vmatpush.msk.msra.mxu2 %vm511_vm2, %v582_v50  ;;  %1095 = vmatpush.msk.msra.mxu1 %vm511_vm2, %v583_v51 }
 0x167   : > { %618 = vmatpush.msra.mxu2 %v580_v52 }
 0x169   : > { %619 = vmatpush.msra.mxu2 %v578_v53 }
 0x16b   : > { %v1213_v54 = vpop.permute.xlu0 %1212 }
 0x16c   : > { %v1215_v55 = vunpack.i.h.bf16 %v1213_v54  ;;  %v1214_v56 = vunpack.i.l.bf16 %v1213_v54 }
 0x16e   : > { %v576_v57 = vsel %vm573_vm9, %v1214_v56, %v1215_v55 }
 0x16f   : > { %620 = vmatpush.msra.mxu2 %v576_v57 }
 0x170   : > { %v1218_v58 = vpop.permute.xlu1 %1217 }
 0x171   : > { %v1220_v59 = vunpack.i.h.bf16 %v1218_v58  ;;  %v1219_v60 = vunpack.i.l.bf16 %v1218_v58 }
 0x173   : > { %v1223_v62 = vpop.permute.xlu0 %1222  ;;  %v574_v63 = vsel %vm573_vm9, %v1219_v60, %v1220_v59 }
 0x174   : > { %v1225_v1 = vunpack.i.h.bf16 %v1223_v62  ;;  %v1224_v5 = vunpack.i.l.bf16 %v1223_v62  ;;  %621 = vmatpush.msra.mxu2 %v574_v63 }
 0x175   : > { %1094 = vmatmul.msk.f32.vlgmr.msra.gmra.mxu2 %vm596_vm10, %v524_v61 }
 0x176   : > { %1097 = vmatpush.msk.msrb.mxu2 %vm511_vm2, %v572_v46  ;;  %v581_v6 = vsel %vm573_vm9, %v1205_v40, %v1224_v5  ;;  %v579_v8 = vsel %vm573_vm9, %v1210_v48, %v1225_v1 }
 0x177   : > { %638 = vmatpush.msra.mxu1 %v581_v6 }
 0x178   : > { %658 = vmatpush.msrb.mxu2 %v1224_v5  ;;  %v1228_v7 = vpop.permute.xlu1 %1227 }
 0x179   : > { %639 = vmatpush.msra.mxu1 %v579_v8  ;;  %v1229_v9 = vunpack.i.l.bf16 %v1228_v7  ;;  %v1230_v10 = vunpack.i.h.bf16 %v1228_v7 }
 0x17a   : > { %659 = vmatpush.msrb.mxu2 %v1225_v1 }
 0x17b   : > { %v577_v11 = vsel %vm573_vm9, %v1215_v55, %v1229_v9  ;;  %v575_v12 = vsel %vm573_vm9, %v1220_v59, %v1230_v10  ;;  %v673_v16 = vpop.permute.xlu0 %672 }
 0x17c   : > { %660 = vmatpush.msrb.mxu2 %v1229_v9  ;;  %640 = vmatpush.msra.mxu1 %v577_v11 }
 0x17e   : > { %661 = vmatpush.msrb.mxu2 %v1230_v10  ;;  %641 = vmatpush.msra.mxu1 %v575_v12 }
 0x17f   : > { %1098 = vmatmul.msk.f32.vlgmr.msrb.gmra.mxu2 %vm596_vm10, %v524_v61  ;;  %1096 = vmatmul.msk.f32.vlgmr.msra.gmra.mxu1 %vm596_vm10, %v524_v61 }
 0x1f8   : > { %v623_v15 = vpop.f32.mrf.mxu2 }
 0x1f9   : > { %v624_v17 = vadd.f32 %v623_v15, %v529_v13 }
 0x1fb   : > { %vm666_vm11 = vcmp.gt.f32.partialorder %v624_v17, 0.0  ;;  %v675_v19 = vmul.f32 %v673_v16, %v624_v17 }
 0x1fc   : > { %v643_v20 = vpop.f32.mrf.mxu1 }
 0x1fd   : > { %v644_v21 = vadd.f32 %v643_v20, %v529_v13  ;;  %v678_v22 = vsel %vm666_vm11, %v624_v17, %v675_v19  ;;  %vm714_vm11 = vcmask 850944  }
 0x1fe   : > { %v689_v23 = vmul.f32 %v683_v18, %v678_v22 }
 0x1ff   : > { %vm667_vm12 = vcmp.gt.f32.partialorder %v644_v21, 0.0  ;;  %v676_v25 = vmul.f32 %v673_v16, %v644_v21 }
 0x200   : > { %700 = vrot.lane.b32.xlu1 %v689_v23, %s1446_s28 }
 0x201   : > { %v679_v26 = vsel %vm667_vm12, %v644_v21, %v676_v25 }
 0x202   : > { %v663_v27 = vpop.f32.mrf.mxu2  ;;  %v690_v28 = vmul.f32 %v684_v24, %v679_v26 }
 0x203   : > { %v664_v29 = vadd.f32 %v663_v27, %v529_v13 }
 0x204   : > { %702 = vrot.lane.b32.xlu2 %v690_v28, %s1446_s28 }
 0x205   : > { %vm668_vm13 = vcmp.gt.f32.partialorder %v664_v29, 0.0  ;;  %v677_v31 = vmul.f32 %v673_v16, %v664_v29 }
 0x207   : > { %v680_v32 = vsel %vm668_vm13, %v664_v29, %v677_v31 }
 0x208   : > { %v691_v33 = vmul.f32 %v685_v30, %v680_v32 }
 0x20a   : > { %704 = vrot.lane.b32.xlu1 %v691_v33, %s1446_s28 }
 0x25e   : > { %v703_v35 = vpop.permute.xlu2 %702 }
 0x272   : > { %v701_v36 = vpop.permute.xlu1 %700 }
 0x273   : > { %v706_v37 = vsel %vm596_vm10, %v701_v36, %v703_v35  ;;  %712 = vst.msk [vmem:[#allocation2] sm:$0xff] %vm711_vm15, %v701_v36 }
 0x27a   : > { %v716_v39 = vld [vmem:[#allocation2] sm:$0xff] }
 0x27b   : > { %v1734_v2 = vpack.i.bf16 %v706_v37, %v716_v39 }
 0x27c   : > { %v705_v3 = vpop.permute.xlu1 %704 }
 0x27d   : > { %v707_v38 = vsel %vm596_vm10, %v703_v35, %v705_v3  ;;  %1244 = vrot.lane.b32.xlu0 %v1734_v2, %s1440_s18  ;;  %1239 = vrot.lane.b32.xlu1 %v1734_v2, %s1441_s19 }
 0x27e   : > { %715 = vst.msk [vmem:[#allocation2 + $0x10] sm:$0xff] %vm714_vm11, %v707_v38  ;;  %1234 = vrot.lane.b32.xlu2 %v1734_v2, %s1442_s26  ;;  %v787_v38 = vld [vmem:[%s1878_s6] sm:$0xf] }
 0x285   : > { %1259 = vrot.lane.b32.xlu0 %v1734_v2, %s1437_s10  ;;  %1254 = vrot.lane.b32.xlu1 %v1734_v2, %s1438_s12  ;;  %v1749_v42 = vld [vmem:[#allocation2 + $0x10] sm:$0xff] }
 0x286   : > { %1249 = vrot.lane.b32.xlu2 %v1734_v2, %s1439_s8 }
 0x28d   : > { %766 = vrot.lane.b32.xlu1 %v1749_v42, %s1440_s18  ;;  %782 = vrot.lane.b32.xlu0 %v1749_v42, %s1442_s26  ;;  %s958_s26 = sld [smem:[#allocation3]] }
 0x28e   : > { %1264 = vrot.lane.b32.xlu2 %v1734_v2, %s1436_s22 }
 0x295   : > { %742 = vrot.lane.b32.xlu1 %v1749_v42, %s1437_s10  ;;  %758 = vrot.lane.b32.xlu0 %v1749_v42, %s1439_s8 }
 0x296   : > { %774 = vrot.lane.b32.xlu2 %v1749_v42, %s1441_s19  ;;  %s962_s19 = sld [smem:[#allocation4]] }
 0x29d   : > { %1269 = vrot.lane.b32.xlu1 %v1734_v2, %s1443_s27  ;;  %734 = vrot.lane.b32.xlu0 %v1749_v42, %s1436_s22 }
 0x29e   : > { %750 = vrot.lane.b32.xlu2 %v1749_v42, %s1438_s12 }
 0x2a6   : > { %726 = vrot.lane.b32.xlu2 %v1749_v42, %s1443_s27  ;;  %s1107_s27 = smul.u32 12, %s1525_s7  ;;  %s999_s7 = scalar_lea.sflag [#allocation7], %s1590_s25 }
 0x2a8   : > { %s1010_s30 = scalar_lea.hbm %s1881_s9, %s1107_s27 }
 0x2a9   : > { %s1014_s22 = sshll.u32 %s1010_s30, 4  ;;  %s1015_s22 = int_to_ptr.hbm [resolvable:$true] %s1014_s22 }
 0x2d8   : > { %v1235_v41 = vpop.permute.xlu2 %1234 }
 0x2d9   : > { %v1237_v18 = vunpack.i.h.bf16 %v1235_v41  ;;  %v1236_v19 = vunpack.i.l.bf16 %v1235_v41 }
 0x2db   : > { %v784_v24 = vsel %vm508_vm5, %v1236_v19, %v1237_v18 }
 0x2e0   : > { %v1250_v43 = vpop.permute.xlu2 %1249 }
 0x2e1   : > { %v1252_v53 = vunpack.i.h.bf16 %v1250_v43  ;;  %v1251_v54 = vunpack.i.l.bf16 %v1250_v43 }
 0x2e3   : > { %v760_v57 = vsel %vm453_vm7, %v1251_v54, %v1252_v53 }
 0x2e8   : > { %v1265_v4 = vpop.permute.xlu2 %1264 }
 0x2e9   : > { %v1267_v20 = vunpack.i.h.bf16 %v1265_v4  ;;  %v1266_v21 = vunpack.i.l.bf16 %v1265_v4 }
 0x2eb   : > { %v736_v28 = vsel %vm397_vm6, %v1266_v21, %v1267_v20 }
 0x2ef   : > { %v1245_v44 = vpop.permute.xlu0 %1244  ;;  %v1240_v40 = vpop.permute.xlu1 %1239 }
 0x2f0   : > { %v1242_v45 = vunpack.i.h.bf16 %v1240_v40  ;;  %v1241_v46 = vunpack.i.l.bf16 %v1240_v40  ;;  %v775_v47 = vpop.permute.xlu2 %774  ;;  %v1247_v55 = vunpack.i.h.bf16 %v1245_v44  ;;  %v1246_v56 = vunpack.i.l.bf16 %v1245_v44 }
 0x2f2   : > { %v776_v48 = vsel %vm490_vm1, %v1241_v46, %v1242_v45  ;;  %v777_v49 = vsel %vm490_vm1, %v1242_v45, %v775_v47  ;;  %v768_v61 = vsel %vm471_vm0, %v1246_v56, %v1247_v55  ;;  %vm892_vm1 = vcmask 588800  }
 0x2f3   : > { %v1293_v50 = vpack.i.bf16 %v777_v49, %v776_v48 }
 0x2f5   : > { %1294 = vrot.lane.b32.xlu1 %v1293_v50, %s1444_s21 }
 0x2f7   : > { %v1260_v51 = vpop.permute.xlu0 %1259  ;;  %v1255_v52 = vpop.permute.xlu1 %1254 }
 0x2f8   : > { %v1257_v1 = vunpack.i.h.bf16 %v1255_v52  ;;  %v1256_v5 = vunpack.i.l.bf16 %v1255_v52  ;;  %v1262_v6 = vunpack.i.h.bf16 %v1260_v51  ;;  %v1261_v7 = vunpack.i.l.bf16 %v1260_v51  ;;  %v751_v8 = vpop.permute.xlu2 %750 }
 0x2fa   : > { %v752_v9 = vsel %vm434_vm4, %v1256_v5, %v1257_v1  ;;  %v753_v10 = vsel %vm434_vm4, %v1257_v1, %v751_v8  ;;  %v744_v11 = vsel %vm416_vm3, %v1261_v7, %v1262_v6 }
 0x2fb   : > { %v1308_v17 = vpack.i.bf16 %v753_v10, %v752_v9 }
 0x2ff   : > { %v783_v58 = vpop.permute.xlu0 %782  ;;  %v767_v59 = vpop.permute.xlu1 %766 }
 0x300   : > { %v1273_v60 = vpack.i.bf16 %v760_v57, %v783_v58  ;;  %v769_v62 = vsel %vm471_vm0, %v1247_v55, %v767_v59  ;;  %v1278_v14 = vpack.i.bf16 %v744_v11, %v767_v59  ;;  %v785_v22 = vsel %vm508_vm5, %v1237_v18, %v783_v58  ;;  %v727_v34 = vpop.permute.xlu2 %726 }
 0x301   : > { %v1298_v63 = vpack.i.bf16 %v769_v62, %v768_v61  ;;  %v1283_v27 = vpack.i.bf16 %v785_v22, %v784_v24 }
 0x302   : > { %1274 = vrot.lane.b32.xlu0 %v1273_v60, %s1444_s21 }
 0x303   : > { %1299 = vrot.lane.b32.xlu2 %v1298_v63, %s1444_s21 }
 0x307   : > { %v759_v12 = vpop.permute.xlu0 %758  ;;  %v743_v13 = vpop.permute.xlu1 %742 }
 0x308   : > { %v761_v15 = vsel %vm453_vm7, %v1252_v53, %v759_v12  ;;  %v745_v23 = vsel %vm416_vm3, %v1262_v6, %v743_v13  ;;  %vm996_vm3 = vcmask 551936  }
 0x309   : > { %v1303_v16 = vpack.i.bf16 %v775_v47, %v761_v15  ;;  %v1313_v30 = vpack.i.bf16 %v759_v12, %v745_v23 }
 0x30a   : > { %1279 = vrot.lane.b32.xlu0 %v1278_v14, %s1444_s21 }
 0x30b   : > { %1309 = vrot.lane.b32.xlu2 %v1308_v17, %s1444_s21  ;;  %1304 = vrot.lane.b32.xlu1 %v1303_v16, %s1444_s21 }
 0x30f   : > { %v735_v25 = vpop.permute.xlu0 %734  ;;  %v1270_v26 = vpop.permute.xlu1 %1269 }
 0x310   : > { %v737_v29 = vsel %vm397_vm6, %v1267_v20, %v735_v25  ;;  %v1272_v32 = vunpack.i.h.bf16 %v1270_v26  ;;  %v1271_v33 = vunpack.i.l.bf16 %v1270_v26  ;;  %v1328_v3 = vpack.i.bf16 %v727_v34, %v735_v25 }
 0x311   : > { %v1318_v31 = vpack.i.bf16 %v737_v29, %v736_v28 }
 0x312   : > { %1284 = vrot.lane.b32.xlu0 %v1283_v27, %s1444_s21  ;;  %v728_v35 = vsel %vm379_vm8, %v1271_v33, %v1272_v32  ;;  %v729_v36 = vsel %vm379_vm8, %v1272_v32, %v727_v34 }
 0x313   : > { %1319 = vrot.lane.b32.xlu2 %v1318_v31, %s1444_s21  ;;  %1314 = vrot.lane.b32.xlu1 %v1313_v30, %s1444_s21  ;;  %v1288_v37 = vpack.i.bf16 %v728_v35, %v751_v8  ;;  %v1333_v39 = vpack.i.bf16 %v743_v13, %v729_v36  ;;  %v786_v31 = vld [vmem:[%s1877_s5] sm:$0xf] }
 0x31a   : > { %1289 = vrot.lane.b32.xlu0 %v1288_v37, %s1444_s21 }
 0x31b   : > { %1324 = vrot.lane.b32.xlu2 %v1734_v2, %s1444_s21  ;;  %1334 = vrot.lane.b32.xlu1 %v1333_v39, %s1444_s21 }
 0x322   : > { %1329 = vrot.lane.b32.xlu0 %v1328_v3, %s1444_s21  ;;  %v963_v3 = vstv %s962_s19  ;;  %s1388_s19 = scalar_lea.hbm %s1881_s9, 24 }
 0x323   : > { %790 = vperm.xlu2 %1231, %v787_v38   ;;  %797 = vrot.lane.b32.xlu1 %v1749_v42, %s1444_s21  ;;  %s1106_s21 = smul.u32 12, %s1590_s25 }
 0x325   : > { %s352_s20 = scalar_lea.vmem [#allocation8], %s1106_s21 }
 0x35d   : > { %v1300_v41 = vpop.permute.xlu2 %1299 }
 0x35e   : > { %v1302_v55 = vunpack.i.h.bf16 %v1300_v41  ;;  %v1301_v56 = vunpack.i.l.bf16 %v1300_v41 }
 0x360   : > { %v859_v5 = vsel %vm573_vm9, %v1301_v56, %v1302_v55 }
 0x365   : > { %v1310_v40 = vpop.permute.xlu2 %1309 }
 0x366   : > { %v1312_v62 = vunpack.i.h.bf16 %v1310_v40  ;;  %v1311_v63 = vunpack.i.l.bf16 %v1310_v40 }
 0x367   : > { %v1295_v4 = vpop.permute.xlu1 %1294 }
 0x368   : > { %v1297_v49 = vunpack.i.h.bf16 %v1295_v4  ;;  %v1296_v50 = vunpack.i.l.bf16 %v1295_v4  ;;  %v855_v13 = vsel %vm573_vm9, %v1311_v63, %v1312_v62 }
 0x36a   : > { %v861_v60 = vsel %vm573_vm9, %v1296_v50, %v1297_v49 }
 0x36d   : > { %v1320_v54 = vpop.permute.xlu2 %1319 }
 0x36e   : > { %v1322_v15 = vunpack.i.h.bf16 %v1320_v54  ;;  %v1321_v16 = vunpack.i.l.bf16 %v1320_v54 }
 0x370   : > { %v851_v26 = vsel %vm573_vm9, %v1321_v16, %v1322_v15 }
 0x374   : > { %v1275_v43 = vpop.permute.xlu0 %1274 }
 0x375   : > { %v1276_v44 = vunpack.i.l.bf16 %v1275_v43  ;;  %v1277_v1 = vunpack.i.h.bf16 %v1275_v43  ;;  %v1325_v19 = vpop.permute.xlu2 %1324 }
 0x376   : > { %v1327_v24 = vunpack.i.h.bf16 %v1325_v19  ;;  %v1326_v25 = vunpack.i.l.bf16 %v1325_v19 }
 0x377   : > { %943 = vmatpush.msrb.mxu1 %v1276_v44 }
 0x378   : > { %v847_v32 = vsel %vm573_vm9, %v1326_v25, %v1327_v24 }
 0x37c   : > { %v1280_v2 = vpop.permute.xlu0 %1279 }
 0x37d   : > { %v1305_v45 = vpop.permute.xlu1 %1304  ;;  %v1281_v47 = vunpack.i.l.bf16 %v1280_v2  ;;  %v1282_v17 = vunpack.i.h.bf16 %v1280_v2  ;;  %v791_v37 = vpop.permute.xlu2 %790 }
 0x37e   : > { %v1307_v46 = vunpack.i.h.bf16 %v1305_v45  ;;  %v1306_v59 = vunpack.i.l.bf16 %v1305_v45 }
 0x37f   : > { %v860_v6 = vsel %vm573_vm9, %v1302_v55, %v1281_v47 }
 0x380   : > { %944 = vmatpush.msrb.mxu1 %v1307_v46  ;;  %v862_v61 = vsel %vm573_vm9, %v1297_v49, %v1307_v46  ;;  %v857_v10 = vsel %vm573_vm9, %v1277_v1, %v1306_v59  ;;  %v957_v49 = vld [vmem:[%s1594_s11 + $0x8] sm:$0xf] }
 0x382   : > { %945 = vmatpush.msrb.mxu1 %v1281_v47 }
 0x384   : > { %v1285_v48 = vpop.permute.xlu0 %1284 }
 0x385   : > { %v1287_v51 = vunpack.i.h.bf16 %v1285_v48  ;;  %v1286_v52 = vunpack.i.l.bf16 %v1285_v48  ;;  %v1315_v53 = vpop.permute.xlu1 %1314  ;;  %v959_v48 = vstv %s958_s26 }
 0x386   : > { %v1317_v42 = vunpack.i.h.bf16 %v1315_v53  ;;  %v1316_v8 = vunpack.i.l.bf16 %v1315_v53  ;;  %v960_v50 = vmul.f32 %v959_v48, %v1601_v0 }
 0x387   : > { %v863_v57 = vsel %vm573_vm9, %v1286_v52, %v1287_v51  ;;  %v864_v58 = vsel %vm573_vm9, %v1287_v51, %v1276_v44  ;;  %v961_v52 = vmul.f32 %v959_v48, %v957_v49 }
 0x388   : > { %903 = vmatpush.msra.mxu3 %v863_v57  ;;  %923 = vmatpush.msra.mxu0 %v864_v58  ;;  %v858_v11 = vsel %vm573_vm9, %v1306_v59, %v1317_v42  ;;  %v853_v23 = vsel %vm573_vm9, %v1282_v17, %v1316_v8 }
 0x389   : > { %946 = vmatpush.msrb.mxu1 %v1317_v42 }
 0x38a   : > { %904 = vmatpush.msra.mxu3 %v861_v60  ;;  %924 = vmatpush.msra.mxu0 %v862_v61 }
 0x38c   : > { %v1290_v7 = vpop.permute.xlu0 %1289  ;;  %905 = vmatpush.msra.mxu3 %v859_v5  ;;  %925 = vmatpush.msra.mxu0 %v860_v6 }
 0x38d   : > { %v1335_v9 = vpop.permute.xlu1 %1334  ;;  %v1291_v12 = vunpack.i.l.bf16 %v1290_v7  ;;  %v1292_v21 = vunpack.i.h.bf16 %v1290_v7 }
 0x38e   : > { %906 = vmatpush.msra.mxu3 %v857_v10  ;;  %926 = vmatpush.msra.mxu0 %v858_v11  ;;  %v1337_v14 = vunpack.i.h.bf16 %v1335_v9  ;;  %v1336_v22 = vunpack.i.l.bf16 %v1335_v9 }
 0x38f   : > { %947 = vmatpush.msrb.mxu1 %v1291_v12  ;;  %v856_v18 = vsel %vm573_vm9, %v1312_v62, %v1291_v12 }
 0x390   : > { %907 = vmatpush.msra.mxu3 %v855_v13  ;;  %927 = vmatpush.msra.mxu0 %v856_v18  ;;  %v854_v20 = vsel %vm573_vm9, %v1316_v8, %v1337_v14  ;;  %v849_v28 = vsel %vm573_vm9, %v1292_v21, %v1336_v22 }
 0x391   : > { %948 = vmatpush.msrb.mxu1 %v1337_v14 }
 0x392   : > { %908 = vmatpush.msra.mxu3 %v853_v23  ;;  %928 = vmatpush.msra.mxu0 %v854_v20 }
 0x394   : > { %v1330_v27 = vpop.permute.xlu0 %1329  ;;  %909 = vmatpush.msra.mxu3 %v851_v26 }
 0x395   : > { %v1331_v29 = vunpack.i.l.bf16 %v1330_v27  ;;  %v1332_v30 = vunpack.i.h.bf16 %v1330_v27  ;;  %v798_v34 = vpop.permute.xlu1 %797 }
 0x396   : > { %910 = vmatpush.msra.mxu3 %v849_v28  ;;  %v848_v36 = vsel %vm573_vm9, %v1327_v24, %v798_v34 }
 0x397   : > { %949 = vmatpush.msrb.mxu1 %v1331_v29  ;;  %v852_v33 = vsel %vm573_vm9, %v1322_v15, %v1331_v29  ;;  %v850_v35 = vsel %vm573_vm9, %v1336_v22, %v1332_v30 }
 0x398   : > { %911 = vmatpush.msra.mxu3 %v847_v32  ;;  %929 = vmatpush.msra.mxu0 %v852_v33 }
 0x399   : > { %1099 = vmatmul.msk.f32.vlgmr.msra.gmra.mxu3 %vm892_vm1, %v786_v31  ;;  %950 = vmatpush.msrb.mxu1 %v1332_v30 }
 0x39a   : > { %930 = vmatpush.msra.mxu0 %v850_v35 }
 0x39b   : > { %951 = vmatpush.msrb.mxu1 %v798_v34 }
 0x39c   : > { %931 = vmatpush.msra.mxu0 %v848_v36  ;;  %1101 = vmatmul.msk.f32.vlgmr.msrb.gmra.mxu1 %vm892_vm1, %v786_v31 }
 0x39d   : > { %1100 = vmatmul.msk.f32.vlgmr.msra.gmra.mxu0 %vm892_vm1, %v786_v31 }
 0x419   : > { %v953_v39 = vpop.f32.mrf.mxu1 }
 0x41a   : > { %v954_v38 = vadd.f32 %v953_v39, %v791_v37  ;;  %v933_v41 = vpop.f32.mrf.mxu0 }
 0x41b   : > { %v934_v43 = vadd.f32 %v933_v41, %v791_v37 }
 0x41c   : > { %v966_v4 = vmul.f32 %v963_v3, %v954_v38  ;;  %v913_v44 = vpop.f32.mrf.mxu3 }
 0x41d   : > { %v965_v40 = vmul.f32 %v963_v3, %v934_v43  ;;  %v914_v2 = vadd.f32 %v913_v44, %v791_v37 }
 0x41e   : > { %974 = vrot.lane.b32.xlu1 %v966_v4, %s1446_s28 }
 0x41f   : > { %v970_v45 = vrot.slane %v965_v40, 4  ;;  %v964_v46 = vmul.f32 %v963_v3, %v914_v2 }
 0x421   : > { %v971_v47 = vsel %vm511_vm2, %v964_v46, %v970_v45 }
 0x422   : > { %972 = vrot.lane.b32.xlu0 %v971_v47, %s1446_s28  ;;  %s1012_s28 = sshll.u32 %s352_s20, 4  ;;  %s1013_s28 = int_to_ptr.vmem [resolvable:$true] %s1012_s28 }
 0x490   : > { %v975_v54 = vpop.permute.xlu1 %974 }
 0x494   : > { %v973_v51 = vpop.permute.xlu0 %972 }
 0x495   : > { %v976_v53 = vrot.slane %v973_v51, 4 }
 0x497   : > { %v977_v42 = vsel %vm596_vm10, %v976_v53, %v973_v51  ;;  %v978_v55 = vsel %vm596_vm10, %v976_v53, %v975_v54 }
 0x498   : > { %v981_v56 = vadd.f32 %v977_v42, %v960_v50  ;;  %v982_v57 = vadd.f32 %v978_v55, %v961_v52 }
 0x49a   : > { %987 = vrot.lane.b32.xlu0 %v982_v57, %s1440_s18  ;;  %985 = vrot.lane.b32.xlu2 %v981_v56, %s1440_s18  ;;  %s1382_s18 = sshra.s32 %s1015_s22, 4  ;;  %s1383_s18 = int_to_ptr.hbm [resolvable:$true] %s1382_s18 }
 0x49b   : > { %s1384_s10 = scalar_lea.hbm %s1383_s18, 12  ;;  %p1389_p0 = scmp.lt.s32.totalorder %s1383_s18, %s1881_s9 }
 0x49c   : > { %p1385_p6 = scmp.ne.s32.totalorder %s1383_s18, %s1384_s10  ;;  %p1390_p1 = scmp.lt.s32.totalorder %s1388_s19, %s1384_s10 }
 0x49e   : > { %p1386_p9 = pnand %p1385_p6, %p1554_p11  ;;  %p1391_p3 = por %p1390_p1, %p1389_p0 }
 0x4a0   : > { %p1387_p13 = pneg %p1386_p9 }
 0x4a2   : > { %p1392_p4 = pnand %p1391_p3, %p1387_p13 }
 0x4f4   : > { %v986_v0 = vpop.permute.xlu2 %985 }
 0x4f5   : > { %v989_v59 = vrot.slane %v986_v0, 4 }
 0x50c   : > { %v988_v58 = vpop.permute.xlu0 %987 }
 0x50d   : > { %v990_v60 = vrot.slane %v988_v58, 4  ;;  %997 = vst.msk [vmem:[%s352_s20 + $0x8] sm:$0xf] %vm996_vm3, %v988_v58 }
 0x50f   : > { %v991_v61 = vsel %vm511_vm2, %v989_v59, %v990_v60 }
 0x510   : > { %v992_v62 = vsel %vm471_vm0, %v986_v0, %v991_v61 }
 0x511   : > { %995 = vst [vmem:[%s352_s20] sm:$0xff] %v992_v62 }
 0x512   : > { %1395 = shalt.err (!%p1392_p4)
}
 0x513   : > { %1110 = dma.vmem_to_hbm [thread:$0]  (%p1554_p11), %s1013_s28, 192, %s1015_s22, %s999_s7  }
 0x514 PF: > { %s1026_s25 = sand.u32 1, %s1422_s13   ;;  %p1888_p7 = scmp.ge.s32.totalorder %s1434_s16, 2 }
 0x515   : > { %s1027_s21 = scalar_lea.sflag [#allocation7], %s1026_s25 }
 0x516   : > { %p1117_p5 = pnand %p1888_p7, %p1558_p12 }
 0x518   : > { %p1118_p8 = pneg %p1117_p5 }
 0x51a   : > { %1417 = dma.done.wait (%p1118_p8), %s1027_s21, 192  }
 0x51b   : > { %1419 = vsyncadd (%p1118_p8), %s1027_s21, 4294967104  ;;  %s1889_s29 = sld [smem:[#allocation11_spill]]  ;;  %p24_p10 = scmp.ge.s32.totalorder %s1529_s17, 4  }
 0x51c   : > { %s1890_s13 = smov %s1426_s14  ;;  %s1891_s14 = smov %s1430_s15 }
 0x51d   : > { %s1893_s16 = smov %s1529_s17  ;;  %26 = sbr.rel (!%p24_p10) target bundleno = 8 (0x8), region = 114 }
 0x521   : > { %s1892_s15 = smov %s1889_s29 }
 0x522   :  { %1033 = vsyncpa [#allocation6], 1 }
 0x523   :  { %1035 = vsyncpa [#allocation6 + $0x1], 1 }
 0x524   :  { %1036 = vsyncpa [#allocation7], 1 }
 0x525   :  { %1038 = vsyncpa [#allocation7 + $0x1], 1 }

</bundles_post_ra>
